<compile_context>
chip_gen: v7x
topology: tpu7x:2x2x1
jax: 0.10.0
libtpu: 0.0.40
codegen_flags: <defaults>
</compile_context>

<pallas_src>
import functools
import math
from collections import deque

import numpy as np
import jax
import jax.numpy as jnp
from jax.experimental import pallas as pl
from jax.experimental.pallas import tpu as pltpu

MAX_NB = 16
HIDDEN = 32
VOCAB = 8


# ----------------------------------------------------------------------------
# small helpers
# ----------------------------------------------------------------------------
def _round_up(x, m):
    return ((x + m - 1) // m) * m


def _pad_rows(m):
    m = max(int(m), 8)
    if m <= 512:
        return _round_up(m, 8)
    return _round_up(m, 256)


def _row_tiling(m):
    # m is already padded by _pad_rows
    if m <= 512:
        return m, 1
    return 256, m // 256


# ----------------------------------------------------------------------------
# Pallas kernels
# ----------------------------------------------------------------------------
def _gru_kernel(nb, x_ref, hnei_ref, wx_ref, wzh_ref, bz_ref,
                ur_ref, br_ref, whh_ref, bh_ref, out_ref):
    # JT-NN GRU:
    #   sum_h = sum_k h_nei[:, k, :]
    #   z = sigmoid(W_z([x, sum_h]))
    #   r_k = sigmoid(W_r(x) + U_r(h_nei_k))
    #   sum_gated = sum_k r_k * h_nei_k
    #   pre_h = tanh(W_h([x, sum_gated]))
    #   new_h = (1 - z) * sum_h + z * pre_h
    #
    # x-side matmuls fused: wx = [Wz_x | Wr | Wh_x]  -> one [M,H]@[H,3H] dot.
    # h_nei arrives flat as [M, nb*H]; neighbor access is static lane slicing.
    H = HIDDEN
    x = x_ref[...]                                                 # [tm, H]
    xw = jnp.dot(x, wx_ref[...], preferred_element_type=jnp.float32)  # [tm, 3H]
    z_x = xw[:, 0:H]
    r1 = xw[:, H:2 * H]
    h_x = xw[:, 2 * H:3 * H]

    hn = hnei_ref[...]                                             # [tm, nb*H]
    ur = ur_ref[...]
    br = br_ref[...]

    sum_h = jnp.zeros_like(x)
    sum_g = jnp.zeros_like(x)
    for k in range(nb):                                            # nb is static & small
        h_k = hn[:, k * H:(k + 1) * H]
        sum_h = sum_h + h_k
        r_k = jax.nn.sigmoid(
            r1 + jnp.dot(h_k, ur, preferred_element_type=jnp.float32) + br)
        sum_g = sum_g + r_k * h_k                                  # zero pads contribute 0

    z = jax.nn.sigmoid(
        z_x + jnp.dot(sum_h, wzh_ref[...], preferred_element_type=jnp.float32)
        + bz_ref[...])
    pre_h = jnp.tanh(
        h_x + jnp.dot(sum_g, whh_ref[...], preferred_element_type=jnp.float32)
        + bh_ref[...])
    out_ref[...] = ((1.0 - z) * sum_h + z * pre_h).astype(out_ref.dtype)


def _node_agg_kernel(xin_ref, w_ref, b_ref, out_ref):
    # relu([x | sum_h_nei] @ W + b) -- single lane-dense [N,2H]@[2H,H] matmul.
    o = (jnp.dot(xin_ref[...], w_ref[...], preferred_element_type=jnp.float32)
         + b_ref[...])
    out_ref[...] = jnp.maximum(o, 0.0).astype(out_ref.dtype)


def gru_pallas(cur_x, cur_h_nei_flat, kp, nb):
    m = cur_x.shape[0]
    H = HIDDEN
    tm, gm = _row_tiling(m)
    row = lambda i: (i, 0)
    const = lambda i: (0, 0)
    kernel = functools.partial(_gru_kernel, nb)
    return pl.pallas_call(
        kernel,
        out_shape=jax.ShapeDtypeStruct((m, H), jnp.float32),
        grid=(gm,),
        in_specs=[
            pl.BlockSpec((tm, H), row),            # cur_x
            pl.BlockSpec((tm, nb * H), row),       # cur_h_nei (flat, lane-dense)
            pl.BlockSpec((H, 3 * H), const),       # [Wz_x | Wr | Wh_x]
            pl.BlockSpec((H, H), const),           # Wz_h
            pl.BlockSpec((1, H), const),           # bz
            pl.BlockSpec((H, H), const),           # Ur
            pl.BlockSpec((1, H), const),           # br
            pl.BlockSpec((H, H), const),           # Wh_h
            pl.BlockSpec((1, H), const),           # bh
        ],
        out_specs=pl.BlockSpec((tm, H), row),
        compiler_params=pltpu.CompilerParams(
            dimension_semantics=("parallel",)),
    )(cur_x, cur_h_nei_flat, kp["Wx_cat"], kp["Wz_h"], kp["bz"],
      kp["Ur"], kp["br"], kp["Wh_h"], kp["bh"])


def node_agg_pallas(node_in, kp):
    n = node_in.shape[0]
    H = HIDDEN
    tm, gm = _row_tiling(n)
    return pl.pallas_call(
        _node_agg_kernel,
        out_shape=jax.ShapeDtypeStruct((n, H), jnp.float32),
        grid=(gm,),
        in_specs=[
            pl.BlockSpec((tm, 2 * H), lambda i: (i, 0)),
            pl.BlockSpec((2 * H, H), lambda i: (0, 0)),
            pl.BlockSpec((1, H), lambda i: (0, 0)),
        ],
        out_specs=pl.BlockSpec((tm, H), lambda i: (i, 0)),
        compiler_params=pltpu.CompilerParams(
            dimension_semantics=("parallel",)),
    )(node_in, kp["W_agg"], kp["b"])


# ----------------------------------------------------------------------------
# Device-side forward (single jit): gather -> GRU kernel -> scatter per step,
# then one node-aggregate kernel over all nodes of the batch.
# ----------------------------------------------------------------------------
def _device_forward(kp, x_wid, gather_idx, scatter_idx, agg_wid, agg_gather,
                    *, nb, num_slots):
    H = HIDDEN
    T, m_pad = x_wid.shape
    emb = kp["embedding"]
    msgs0 = jnp.zeros((num_slots, H), jnp.float32)   # slot 0 = zero padding

    def step(t, msgs):
        wid = jax.lax.dynamic_index_in_dim(x_wid, t, 0, keepdims=False)
        gidx = jax.lax.dynamic_index_in_dim(gather_idx, t, 0, keepdims=False)
        sidx = jax.lax.dynamic_index_in_dim(scatter_idx, t, 0, keepdims=False)
        cur_x = jnp.take(emb, wid, axis=0)                               # [m_pad, H]
        cur_h = jnp.take(msgs, gidx.reshape(-1), axis=0)                 # [m_pad*nb, H]
        cur_h = cur_h.reshape(m_pad, nb * H)                             # lane-dense
        new_h = gru_pallas(cur_x, cur_h, kp, nb)
        return msgs.at[sidx].set(new_h)          # padded rows scatter to trash slot

    msgs = jax.lax.fori_loop(0, T, step, msgs0) if T > 0 else msgs0

    x_vec = jnp.take(emb, agg_wid, axis=0)                               # [N_pad, H]
    h_nei = jnp.take(msgs, agg_gather.reshape(-1), axis=0)
    h_nei = h_nei.reshape(agg_wid.shape[0], nb, H)
    sum_h = jnp.sum(h_nei, axis=1)
    node_in = jnp.concatenate([x_vec, sum_h], axis=1)                    # [N_pad, 2H]
    return node_agg_pallas(node_in, kp)


# ----------------------------------------------------------------------------
# Pure-JAX references (for correctness check; original dict-based orchestration)
# ----------------------------------------------------------------------------
def gru_ref(cur_x, cur_h_nei, p):
    sum_h = jnp.sum(cur_h_nei, axis=1)
    z = jax.nn.sigmoid(cur_x @ p["Wz_x"] + sum_h @ p["Wz_h"] + p["bz"])
    r1 = (cur_x @ p["Wr"])[:, None, :]
    r2 = cur_h_nei @ p["Ur"] + p["br"]
    r = jax.nn.sigmoid(r1 + r2)
    sum_gated = jnp.sum(r * cur_h_nei, axis=1)
    pre_h = jnp.tanh(cur_x @ p["Wh_x"] + sum_gated @ p["Wh_h"] + p["bh"])
    return (1.0 - z) * sum_h + z * pre_h


def node_agg_ref(x_vec, sum_h_nei, p):
    return jnp.maximum(x_vec @ p["W_x"] + sum_h_nei @ p["W_h"] + p["b"], 0.0)


# ----------------------------------------------------------------------------
# Tree data structures + prop-order (host-side glue, mirrors PyTorch code)
# ----------------------------------------------------------------------------
class FTNode:
    def __init__(self, idx, wid):
        self.idx = idx
        self.wid = wid
        self.neighbors = []


class FTree:
    def __init__(self, nodes):
        self.nodes = nodes


def get_prop_order(root):
    queue = deque([root])
    visited = set([root.idx])
    root.depth = 0
    order1, order2 = [], []
    while len(queue) > 0:
        x = queue.popleft()
        for y in x.neighbors:
            if y.idx not in visited:
                queue.append(y)
                visited.add(y.idx)
                y.depth = x.depth + 1
                if y.depth > len(order1):
                    order1.append([])
                    order2.append([])
                order1[y.depth - 1].append((x, y))
                order2[y.depth - 1].append((y, x))
    order = order2[::-1] + order1
    return order


# ----------------------------------------------------------------------------
# Host-side plan: precompute all gather/scatter index arrays once per batch.
# ----------------------------------------------------------------------------
def build_plan(tree_batch):
    orders = [get_prop_order(tree.nodes[0]) for tree in tree_batch]
    n_nodes = [len(t.nodes) for t in tree_batch]
    max_n_nodes = max(n_nodes)
    max_depth = max((len(o) for o in orders), default=0)

    # per-step prop lists and message-id assignment (slot 0 = zero padding)
    edge_id = {}
    prop_steps = []
    for t in range(max_depth):
        plist = []
        for order in orders:
            if len(order) > t:
                plist.extend(order[t])
        for nx, ny in plist:
            edge_id[(nx.idx, ny.idx)] = len(edge_id) + 1
        prop_steps.append(plist)
    num_msgs = len(edge_id)
    trash = num_msgs + 1                      # sink for padded rows
    num_slots = _round_up(num_msgs + 2, 8)

    # actual max fan-in for this batch (replaces hard-coded MAX_NB=16)
    nb = 1
    for plist in prop_steps:
        for nx, ny in plist:
            nb = max(nb, len(nx.neighbors) - 1)
    for tree in tree_batch:
        for node in tree.nodes:
            nb = max(nb, len(node.neighbors))
    assert nb <= MAX_NB, "node degree exceeds MAX_NB"

    T = max_depth
    m_max = max((len(p) for p in prop_steps), default=1)
    m_pad = _pad_rows(m_max)

    x_wid = np.zeros((T, m_pad), np.int32)
    gather = np.zeros((T, m_pad, nb), np.int32)
    scatter = np.full((T, m_pad), trash, np.int32)
    for t, plist in enumerate(prop_steps):
        for i, (nx, ny) in enumerate(plist):
            x_wid[t, i] = nx.wid
            col = 0
            for nz in nx.neighbors:
                if nz.idx == ny.idx:
                    continue
                gather[t, i, col] = edge_id[(nz.idx, nx.idx)]
                col += 1
            scatter[t, i] = edge_id[(nx.idx, ny.idx)]

    # node-aggregate indices for ALL nodes (tree order) -> one kernel call
    all_nodes = [node for tree in tree_batch for node in tree.nodes]
    n_total = len(all_nodes)
    n_pad = _pad_rows(n_total)
    agg_wid = np.zeros((n_pad,), np.int32)
    agg_gather = np.zeros((n_pad, nb), np.int32)
    for i, node in enumerate(all_nodes):
        agg_wid[i] = node.wid
        for c, ny in enumerate(node.neighbors):
            agg_gather[i, c] = edge_id[(ny.idx, node.idx)]

    node_offsets = np.concatenate([[0], np.cumsum(n_nodes)])[:-1]
    root_pos = node_offsets.copy()            # tree.nodes[0] is first per tree

    return dict(T=T, nb=nb, num_slots=num_slots, m_pad=m_pad,
                x_wid=x_wid, gather=gather, scatter=scatter,
                agg_wid=agg_wid, agg_gather=agg_gather,
                n_nodes=n_nodes, max_n_nodes=max_n_nodes,
                node_offsets=node_offsets, root_pos=root_pos)


def ft_encoder_forward_pallas(tree_batch, params):
    plan = build_plan(tree_batch)
    kp = prepare_kernel_params(params)

    fwd = jax.jit(functools.partial(_device_forward,
                                    nb=plan["nb"], num_slots=plan["num_slots"]))
    agg = fwd(kp,
              jnp.asarray(plan["x_wid"]),
              jnp.asarray(plan["gather"]),
              jnp.asarray(plan["scatter"]),
              jnp.asarray(plan["agg_wid"]),
              jnp.asarray(plan["agg_gather"]))

    root_vecs = agg[jnp.asarray(plan["root_pos"], jnp.int32)]
    encoder_outputs = []
    for i, n in enumerate(plan["n_nodes"]):
        off = int(plan["node_offsets"][i])
        enc = agg[off:off + n]
        n_padd = plan["max_n_nodes"] - n
        if n_padd > 0:
            enc = jnp.concatenate(
                [enc, jnp.zeros((n_padd, HIDDEN), jnp.float32)], axis=0)
        encoder_outputs.append(enc)
    return encoder_outputs, root_vecs


# ----------------------------------------------------------------------------
# Reference forward (dict orchestration, pure JAX) — correctness oracle only.
# ----------------------------------------------------------------------------
def node_aggregate_ref(nodes, h, params):
    padding = jnp.zeros((HIDDEN,), jnp.float32)
    x_idx, h_nei = [], []
    for node_x in nodes:
        x_idx.append(node_x.wid)
        nei = [h[(node_y.idx, node_x.idx)] for node_y in node_x.neighbors]
        nei = nei + [padding] * (MAX_NB - len(nei))
        h_nei.extend(nei)
    h_nei = jnp.stack(h_nei, axis=0).reshape(-1, MAX_NB, HIDDEN)
    sum_h_nei = jnp.sum(h_nei, axis=1)
    x_vec = params["embedding"][jnp.array(x_idx, dtype=jnp.int32)]
    return node_agg_ref(x_vec, sum_h_nei, params)


def ft_encoder_forward_ref(tree_batch, params):
    orders, n_nodes = [], []
    for tree in tree_batch:
        orders.append(get_prop_order(tree.nodes[0]))
        n_nodes.append(len(tree.nodes))
    max_n_nodes = max(n_nodes)

    h = {}
    max_depth = max(len(order) for order in orders)
    padding = jnp.zeros((HIDDEN,), jnp.float32)

    for t in range(max_depth):
        prop_list = []
        for order in orders:
            if len(order) > t:
                prop_list.extend(order[t])
        cur_x_idx, cur_h_nei = [], []
        for node_x, node_y in prop_list:
            x, y = node_x.idx, node_y.idx
            cur_x_idx.append(node_x.wid)
            h_nei = [h[(node_z.idx, x)] for node_z in node_x.neighbors
                     if node_z.idx != y]
            h_nei = h_nei + [padding] * (MAX_NB - len(h_nei))
            cur_h_nei.extend(h_nei)
        cur_x = params["embedding"][jnp.array(cur_x_idx, dtype=jnp.int32)]
        cur_h_nei = jnp.stack(cur_h_nei, axis=0).reshape(-1, MAX_NB, HIDDEN)
        new_h = gru_ref(cur_x, cur_h_nei, params)
        for i, (nx, ny) in enumerate(prop_list):
            h[(nx.idx, ny.idx)] = new_h[i]

    root_nodes = [tree.nodes[0] for tree in tree_batch]
    root_vecs = node_aggregate_ref(root_nodes, h, params)

    encoder_outputs = []
    for tree in tree_batch:
        enc = node_aggregate_ref(list(tree.nodes), h, params)
        n_pad = max_n_nodes - enc.shape[0]
        if n_pad > 0:
            enc = jnp.concatenate(
                [enc, jnp.zeros((n_pad, HIDDEN), jnp.float32)], 0)
        encoder_outputs.append(enc)
    return encoder_outputs, root_vecs


# ----------------------------------------------------------------------------
# Parameters
# ----------------------------------------------------------------------------
def init_params(key):
    ks = jax.random.split(key, 13)
    H = HIDDEN

    def lin(k, fan_in, shape):
        bound = 1.0 / math.sqrt(fan_in)
        return jax.random.uniform(k, shape, jnp.float32, -bound, bound)

    return {
        "embedding": jax.random.normal(ks[0], (VOCAB, H), jnp.float32),
        # W_z : Linear(2H -> H) split into x-part and sum_h-part (pre-transposed)
        "Wz_x": lin(ks[1], 2 * H, (H, H)),
        "Wz_h": lin(ks[2], 2 * H, (H, H)),
        "bz":   lin(ks[3], 2 * H, (1, H)),
        # W_r : Linear(H -> H, bias=False), U_r : Linear(H -> H)
        "Wr":   lin(ks[4], H, (H, H)),
        "Ur":   lin(ks[5], H, (H, H)),
        "br":   lin(ks[6], H, (1, H)),
        # W_h : Linear(2H -> H)
        "Wh_x": lin(ks[7], 2 * H, (H, H)),
        "Wh_h": lin(ks[8], 2 * H, (H, H)),
        "bh":   lin(ks[9], 2 * H, (1, H)),
        # W : Linear(2H -> H) for node_aggregate
        "W_x":  lin(ks[10], 2 * H, (H, H)),
        "W_h":  lin(ks[11], 2 * H, (H, H)),
        "b":    lin(ks[12], 2 * H, (1, H)),
    }


def prepare_kernel_params(params):
    # Fused weight layouts for the kernels (done once, outside the hot path).
    return {
        "embedding": params["embedding"],
        "Wx_cat": jnp.concatenate(
            [params["Wz_x"], params["Wr"], params["Wh_x"]], axis=1),   # [H, 3H]
        "Wz_h": params["Wz_h"],
        "bz": params["bz"],
        "Ur": params["Ur"],
        "br": params["br"],
        "Wh_h": params["Wh_h"],
        "bh": params["bh"],
        "W_agg": jnp.concatenate([params["W_x"], params["W_h"]], axis=0),  # [2H, H]
        "b": params["b"],
    }


def build_tree_batch():
    # Tree 1: 4 nodes, edges 0-1, 0-2, 1-3        (global idx 0..3)
    # Tree 2: 3 nodes, edges 4-5, 5-6             (global idx 4..6)
    n = [FTNode(i, wid) for i, wid in enumerate([1, 3, 5, 2, 0, 7, 4])]

    def connect(a, b):
        n[a].neighbors.append(n[b])
        n[b].neighbors.append(n[a])

    connect(0, 1); connect(0, 2); connect(1, 3)
    connect(4, 5); connect(5, 6)
    return [FTree(n[0:4]), FTree(n[4:7])]


if __name__ == "__main__":
    key = jax.random.PRNGKey(0)
    params = init_params(key)
    tree_batch = build_tree_batch()

    # Pallas forward (single jitted device program)
    enc_outs, root_vecs = ft_encoder_forward_pallas(tree_batch, params)
    root_vecs = jax.block_until_ready(root_vecs)
    enc_outs = [jax.block_until_ready(e) for e in enc_outs]

    # Pure-JAX reference forward for correctness check
    enc_ref, root_ref = ft_encoder_forward_ref(tree_batch, params)
    np.testing.assert_allclose(np.asarray(root_vecs), np.asarray(root_ref),
                               rtol=1e-5, atol=1e-5)
    for a, b in zip(enc_outs, enc_ref):
        np.testing.assert_allclose(np.asarray(a), np.asarray(b),
                                   rtol=1e-5, atol=1e-5)

    assert root_vecs.shape == (len(tree_batch), HIDDEN)
    max_n = max(len(t.nodes) for t in tree_batch)
    assert all(e.shape == (max_n, HIDDEN) for e in enc_outs)

    print("KERNEL_OK")
</pallas_src>

<mosaic_0001>
module attributes {stable_mosaic.version = 11 : i64} {
  func.func @_gru_kernel(%arg0: i32, %arg1: memref<8x32xf32, #tpu.memory_space<vmem>>, %arg2: memref<8x64xf32, #tpu.memory_space<vmem>>, %arg3: memref<32x96xf32, #tpu.memory_space<vmem>>, %arg4: memref<32x32xf32, #tpu.memory_space<vmem>>, %arg5: memref<1x32xf32, #tpu.memory_space<vmem>>, %arg6: memref<32x32xf32, #tpu.memory_space<vmem>>, %arg7: memref<1x32xf32, #tpu.memory_space<vmem>>, %arg8: memref<32x32xf32, #tpu.memory_space<vmem>>, %arg9: memref<1x32xf32, #tpu.memory_space<vmem>>, %arg10: memref<8x32xf32, #tpu.memory_space<vmem>>) attributes {dimension_semantics = [#tpu.dimension_semantics<parallel>], iteration_bounds = array<i64: 1>, scalar_prefetch = 0 : i64, scratch_operands = 0 : i64, tpu.core_type = #tpu.core_type<tc>, window_params = [{transform_indices = @transform_0, window_bounds = array<i64: 8, 32>}, {transform_indices = @transform_1, window_bounds = array<i64: 8, 64>}, {pipeline_mode = #tpu.pipeline_mode<synchronous>, transform_indices = @transform_2, window_bounds = array<i64: 32, 96>}, {pipeline_mode = #tpu.pipeline_mode<synchronous>, transform_indices = @transform_3, window_bounds = array<i64: 32, 32>}, {pipeline_mode = #tpu.pipeline_mode<synchronous>, transform_indices = @transform_4, window_bounds = array<i64: 1, 32>}, {pipeline_mode = #tpu.pipeline_mode<synchronous>, transform_indices = @transform_5, window_bounds = array<i64: 32, 32>}, {pipeline_mode = #tpu.pipeline_mode<synchronous>, transform_indices = @transform_6, window_bounds = array<i64: 1, 32>}, {pipeline_mode = #tpu.pipeline_mode<synchronous>, transform_indices = @transform_7, window_bounds = array<i64: 32, 32>}, {pipeline_mode = #tpu.pipeline_mode<synchronous>, transform_indices = @transform_8, window_bounds = array<i64: 1, 32>}, {transform_indices = @transform_9, window_bounds = array<i64: 8, 32>}]} {
    %c0 = arith.constant 0 : index
    %c0_0 = arith.constant 0 : index
    %0 = vector.load %arg1[%c0, %c0_0] : memref<8x32xf32, #tpu.memory_space<vmem>>, vector<8x32xf32>
    %c0_1 = arith.constant 0 : index
    %c0_2 = arith.constant 0 : index
    %1 = vector.load %arg3[%c0_1, %c0_2] : memref<32x96xf32, #tpu.memory_space<vmem>>, vector<32x96xf32>
    %cst = arith.constant dense<0.000000e+00> : vector<8x96xf32>
    %2 = tpu.matmul %0, %1, %cst {dimension_numbers = #tpu.dot_dimension_numbers<[1], [0], [0], [1], [0, 0, 1, 1], [], []>} : vector<8x32xf32>, vector<32x96xf32>, vector<8x96xf32> -> vector<8x96xf32>
    %3 = vector.extract_strided_slice %2 {offsets = [0, 0], sizes = [8, 32], strides = [1, 1]} : vector<8x96xf32> to vector<8x32xf32>
    %4 = vector.extract_strided_slice %2 {offsets = [0, 32], sizes = [8, 32], strides = [1, 1]} : vector<8x96xf32> to vector<8x32xf32>
    %5 = vector.extract_strided_slice %2 {offsets = [0, 64], sizes = [8, 32], strides = [1, 1]} : vector<8x96xf32> to vector<8x32xf32>
    %c0_3 = arith.constant 0 : index
    %c0_4 = arith.constant 0 : index
    %6 = vector.load %arg2[%c0_3, %c0_4] : memref<8x64xf32, #tpu.memory_space<vmem>>, vector<8x64xf32>
    %c0_5 = arith.constant 0 : index
    %c0_6 = arith.constant 0 : index
    %7 = vector.load %arg6[%c0_5, %c0_6] : memref<32x32xf32, #tpu.memory_space<vmem>>, vector<32x32xf32>
    %c0_7 = arith.constant 0 : index
    %c0_8 = arith.constant 0 : index
    %8 = vector.load %arg7[%c0_7, %c0_8] : memref<1x32xf32, #tpu.memory_space<vmem>>, vector<1x32xf32>
    %cst_9 = arith.constant 0.000000e+00 : f32
    %9 = vector.broadcast %cst_9 : f32 to vector<8x32xf32>
    %cst_10 = arith.constant 0.000000e+00 : f32
    %10 = vector.broadcast %cst_10 : f32 to vector<8x32xf32>
    %11 = vector.extract_strided_slice %6 {offsets = [0, 0], sizes = [8, 32], strides = [1, 1]} : vector<8x64xf32> to vector<8x32xf32>
    %12 = arith.addf %9, %11 : vector<8x32xf32>
    %cst_11 = arith.constant dense<0.000000e+00> : vector<8x32xf32>
    %13 = tpu.matmul %11, %7, %cst_11 {dimension_numbers = #tpu.dot_dimension_numbers<[1], [0], [0], [1], [0, 0, 1, 1], [], []>} : vector<8x32xf32>, vector<32x32xf32>, vector<8x32xf32> -> vector<8x32xf32>
    %14 = arith.addf %4, %13 : vector<8x32xf32>
    %15 = vector.broadcast %8 : vector<1x32xf32> to vector<8x32xf32>
    %16 = arith.addf %14, %15 : vector<8x32xf32>
    %17 = arith.negf %16 : vector<8x32xf32>
    %18 = math.exp %17 : vector<8x32xf32>
    %cst_12 = arith.constant 1.000000e+00 : f32
    %19 = vector.broadcast %cst_12 : f32 to vector<8x32xf32>
    %20 = arith.addf %19, %18 : vector<8x32xf32>
    %21 = arith.divf %19, %20 : vector<8x32xf32>
    %22 = arith.mulf %21, %11 : vector<8x32xf32>
    %23 = arith.addf %10, %22 : vector<8x32xf32>
    %24 = vector.extract_strided_slice %6 {offsets = [0, 32], sizes = [8, 32], strides = [1, 1]} : vector<8x64xf32> to vector<8x32xf32>
    %25 = arith.addf %12, %24 : vector<8x32xf32>
    %cst_13 = arith.constant dense<0.000000e+00> : vector<8x32xf32>
    %26 = tpu.matmul %24, %7, %cst_13 {dimension_numbers = #tpu.dot_dimension_numbers<[1], [0], [0], [1], [0, 0, 1, 1], [], []>} : vector<8x32xf32>, vector<32x32xf32>, vector<8x32xf32> -> vector<8x32xf32>
    %27 = arith.addf %4, %26 : vector<8x32xf32>
    %28 = vector.broadcast %8 : vector<1x32xf32> to vector<8x32xf32>
    %29 = arith.addf %27, %28 : vector<8x32xf32>
    %30 = arith.negf %29 : vector<8x32xf32>
    %31 = math.exp %30 : vector<8x32xf32>
    %cst_14 = arith.constant 1.000000e+00 : f32
    %32 = vector.broadcast %cst_14 : f32 to vector<8x32xf32>
    %33 = arith.addf %32, %31 : vector<8x32xf32>
    %34 = arith.divf %32, %33 : vector<8x32xf32>
    %35 = arith.mulf %34, %24 : vector<8x32xf32>
    %36 = arith.addf %23, %35 : vector<8x32xf32>
    %c0_15 = arith.constant 0 : index
    %c0_16 = arith.constant 0 : index
    %37 = vector.load %arg4[%c0_15, %c0_16] : memref<32x32xf32, #tpu.memory_space<vmem>>, vector<32x32xf32>
    %cst_17 = arith.constant dense<0.000000e+00> : vector<8x32xf32>
    %38 = tpu.matmul %25, %37, %cst_17 {dimension_numbers = #tpu.dot_dimension_numbers<[1], [0], [0], [1], [0, 0, 1, 1], [], []>} : vector<8x32xf32>, vector<32x32xf32>, vector<8x32xf32> -> vector<8x32xf32>
    %39 = arith.addf %3, %38 : vector<8x32xf32>
    %c0_18 = arith.constant 0 : index
    %c0_19 = arith.constant 0 : index
    %40 = vector.load %arg5[%c0_18, %c0_19] : memref<1x32xf32, #tpu.memory_space<vmem>>, vector<1x32xf32>
    %41 = vector.broadcast %40 : vector<1x32xf32> to vector<8x32xf32>
    %42 = arith.addf %39, %41 : vector<8x32xf32>
    %43 = arith.negf %42 : vector<8x32xf32>
    %44 = math.exp %43 : vector<8x32xf32>
    %cst_20 = arith.constant 1.000000e+00 : f32
    %45 = vector.broadcast %cst_20 : f32 to vector<8x32xf32>
    %46 = arith.addf %45, %44 : vector<8x32xf32>
    %47 = arith.divf %45, %46 : vector<8x32xf32>
    %c0_21 = arith.constant 0 : index
    %c0_22 = arith.constant 0 : index
    %48 = vector.load %arg8[%c0_21, %c0_22] : memref<32x32xf32, #tpu.memory_space<vmem>>, vector<32x32xf32>
    %cst_23 = arith.constant dense<0.000000e+00> : vector<8x32xf32>
    %49 = tpu.matmul %36, %48, %cst_23 {dimension_numbers = #tpu.dot_dimension_numbers<[1], [0], [0], [1], [0, 0, 1, 1], [], []>} : vector<8x32xf32>, vector<32x32xf32>, vector<8x32xf32> -> vector<8x32xf32>
    %50 = arith.addf %5, %49 : vector<8x32xf32>
    %c0_24 = arith.constant 0 : index
    %c0_25 = arith.constant 0 : index
    %51 = vector.load %arg9[%c0_24, %c0_25] : memref<1x32xf32, #tpu.memory_space<vmem>>, vector<1x32xf32>
    %52 = vector.broadcast %51 : vector<1x32xf32> to vector<8x32xf32>
    %53 = arith.addf %50, %52 : vector<8x32xf32>
    %54 = math.tanh %53 : vector<8x32xf32>
    %cst_26 = arith.constant 1.000000e+00 : f32
    %55 = vector.broadcast %cst_26 : f32 to vector<8x32xf32>
    %56 = arith.subf %55, %47 : vector<8x32xf32>
    %57 = arith.mulf %56, %25 : vector<8x32xf32>
    %58 = arith.mulf %47, %54 : vector<8x32xf32>
    %59 = arith.addf %57, %58 : vector<8x32xf32>
    %c0_27 = arith.constant 0 : index
    %c0_28 = arith.constant 0 : index
    %60 = vector.load %arg10[%c0_27, %c0_28] : memref<8x32xf32, #tpu.memory_space<vmem>>, vector<8x32xf32>
    tpu.vector_store %arg10[%c0_27, %c0_28], %59 {strides = array<i32>} : memref<8x32xf32, #tpu.memory_space<vmem>>, vector<8x32xf32>,
    return
  }
  func.func @transform_0(%arg0: i32) -> (i32, i32) {
    %c0_i32 = arith.constant 0 : i32
    %c0_i32_0 = arith.constant 0 : i32
    return %arg0, %c0_i32 : i32, i32
  }
  func.func @transform_1(%arg0: i32) -> (i32, i32) {
    %c0_i32 = arith.constant 0 : i32
    %c0_i32_0 = arith.constant 0 : i32
    return %arg0, %c0_i32 : i32, i32
  }
  func.func @transform_2(%arg0: i32) -> (i32, i32) {
    %c0_i32 = arith.constant 0 : i32
    %c0_i32_0 = arith.constant 0 : i32
    %c0_i32_1 = arith.constant 0 : i32
    return %c0_i32, %c0_i32_0 : i32, i32
  }
  func.func @transform_3(%arg0: i32) -> (i32, i32) {
    %c0_i32 = arith.constant 0 : i32
    %c0_i32_0 = arith.constant 0 : i32
    %c0_i32_1 = arith.constant 0 : i32
    return %c0_i32, %c0_i32_0 : i32, i32
  }
  func.func @transform_4(%arg0: i32) -> (i32, i32) {
    %c0_i32 = arith.constant 0 : i32
    %c0_i32_0 = arith.constant 0 : i32
    %c0_i32_1 = arith.constant 0 : i32
    return %c0_i32, %c0_i32_0 : i32, i32
  }
  func.func @transform_5(%arg0: i32) -> (i32, i32) {
    %c0_i32 = arith.constant 0 : i32
    %c0_i32_0 = arith.constant 0 : i32
    %c0_i32_1 = arith.constant 0 : i32
    return %c0_i32, %c0_i32_0 : i32, i32
  }
  func.func @transform_6(%arg0: i32) -> (i32, i32) {
    %c0_i32 = arith.constant 0 : i32
    %c0_i32_0 = arith.constant 0 : i32
    %c0_i32_1 = arith.constant 0 : i32
    return %c0_i32, %c0_i32_0 : i32, i32
  }
  func.func @transform_7(%arg0: i32) -> (i32, i32) {
    %c0_i32 = arith.constant 0 : i32
    %c0_i32_0 = arith.constant 0 : i32
    %c0_i32_1 = arith.constant 0 : i32
    return %c0_i32, %c0_i32_0 : i32, i32
  }
  func.func @transform_8(%arg0: i32) -> (i32, i32) {
    %c0_i32 = arith.constant 0 : i32
    %c0_i32_0 = arith.constant 0 : i32
    %c0_i32_1 = arith.constant 0 : i32
    return %c0_i32, %c0_i32_0 : i32, i32
  }
  func.func @transform_9(%arg0: i32) -> (i32, i32) {
    %c0_i32 = arith.constant 0 : i32
    %c0_i32_0 = arith.constant 0 : i32
    return %arg0, %c0_i32 : i32, i32
  }
}

module attributes {stable_mosaic.version = 11 : i64} {
  func.func @_node_agg_kernel(%arg0: i32, %arg1: memref<8x64xf32, #tpu.memory_space<vmem>>, %arg2: memref<64x32xf32, #tpu.memory_space<vmem>>, %arg3: memref<1x32xf32, #tpu.memory_space<vmem>>, %arg4: memref<8x32xf32, #tpu.memory_space<vmem>>) attributes {dimension_semantics = [#tpu.dimension_semantics<parallel>], iteration_bounds = array<i64: 1>, scalar_prefetch = 0 : i64, scratch_operands = 0 : i64, tpu.core_type = #tpu.core_type<tc>, window_params = [{transform_indices = @transform_0, window_bounds = array<i64: 8, 64>}, {pipeline_mode = #tpu.pipeline_mode<synchronous>, transform_indices = @transform_1, window_bounds = array<i64: 64, 32>}, {pipeline_mode = #tpu.pipeline_mode<synchronous>, transform_indices = @transform_2, window_bounds = array<i64: 1, 32>}, {transform_indices = @transform_3, window_bounds = array<i64: 8, 32>}]} {
    %c0 = arith.constant 0 : index
    %c0_0 = arith.constant 0 : index
    %0 = vector.load %arg1[%c0, %c0_0] : memref<8x64xf32, #tpu.memory_space<vmem>>, vector<8x64xf32>
    %c0_1 = arith.constant 0 : index
    %c0_2 = arith.constant 0 : index
    %1 = vector.load %arg2[%c0_1, %c0_2] : memref<64x32xf32, #tpu.memory_space<vmem>>, vector<64x32xf32>
    %cst = arith.constant dense<0.000000e+00> : vector<8x32xf32>
    %2 = tpu.matmul %0, %1, %cst {dimension_numbers = #tpu.dot_dimension_numbers<[1], [0], [0], [1], [0, 0, 1, 1], [], []>} : vector<8x64xf32>, vector<64x32xf32>, vector<8x32xf32> -> vector<8x32xf32>
    %c0_3 = arith.constant 0 : index
    %c0_4 = arith.constant 0 : index
    %3 = vector.load %arg3[%c0_3, %c0_4] : memref<1x32xf32, #tpu.memory_space<vmem>>, vector<1x32xf32>
    %4 = vector.broadcast %3 : vector<1x32xf32> to vector<8x32xf32>
    %5 = arith.addf %2, %4 : vector<8x32xf32>
    %cst_5 = arith.constant 0.000000e+00 : f32
    %6 = vector.broadcast %cst_5 : f32 to vector<8x32xf32>
    %7 = arith.maximumf %5, %6 : vector<8x32xf32>
    %c0_6 = arith.constant 0 : index
    %c0_7 = arith.constant 0 : index
    %8 = vector.load %arg4[%c0_6, %c0_7] : memref<8x32xf32, #tpu.memory_space<vmem>>, vector<8x32xf32>
    tpu.vector_store %arg4[%c0_6, %c0_7], %7 {strides = array<i32>} : memref<8x32xf32, #tpu.memory_space<vmem>>, vector<8x32xf32>,
    return
  }
  func.func @transform_0(%arg0: i32) -> (i32, i32) {
    %c0_i32 = arith.constant 0 : i32
    %c0_i32_0 = arith.constant 0 : i32
    return %arg0, %c0_i32 : i32, i32
  }
  func.func @transform_1(%arg0: i32) -> (i32, i32) {
    %c0_i32 = arith.constant 0 : i32
    %c0_i32_0 = arith.constant 0 : i32
    %c0_i32_1 = arith.constant 0 : i32
    return %c0_i32, %c0_i32_0 : i32, i32
  }
  func.func @transform_2(%arg0: i32) -> (i32, i32) {
    %c0_i32 = arith.constant 0 : i32
    %c0_i32_0 = arith.constant 0 : i32
    %c0_i32_1 = arith.constant 0 : i32
    return %c0_i32, %c0_i32_0 : i32, i32
  }
  func.func @transform_3(%arg0: i32) -> (i32, i32) {
    %c0_i32 = arith.constant 0 : i32
    %c0_i32_0 = arith.constant 0 : i32
    return %arg0, %c0_i32 : i32, i32
  }
}

</mosaic_0001>

<bundles_post_ra>
// kernel: _device_forward.1
= control target key start
LH: loop header
LB: loop body
LE: loop exit
PB: predicated region body
PF: predicated region fallthrough
CT: control target
= control target key end

     0   :  { %v192_v3 = vmov 0.0|0.0   ;;  %vm193_vm0 = vmmov 0   ;;  %v194_v6 = vmov 0.0   ;;  %s258_s0 = inlined_call_operand.vmem [shape: f32[8,64], index: 0, kind: input, shape index: {}]   ;;  %s259_s1 = inlined_call_operand.vmem [shape: f32[64,32], index: 1, kind: input, shape index: {}]   ;;  %s260_s2 = inlined_call_operand.vmem [shape: f32[1,32], index: 2, kind: input, shape index: {}]   ;;  %s261_s3 = inlined_call_operand.hbm [shape: f32[8,32], index: 3, kind: output, shape index: {}]  }
   0x1   :  { %v16_v0 = vld [vmem:[%s259_s1] sm:$0xff]  ;;  %v17_v1 = vld [vmem:[%s259_s1 + $0x8] sm:$0xff]  ;;  %v18_v2 = vld [vmem:[%s259_s1 + $0x10] sm:$0xff]  ;;  %152 = vmatprep.subr.bf16.mxu0 %v192_v3  ;;  %149 = vmatprep.mubr.msk.f32.mxu0 %vm193_vm0, %v194_v6 }
   0x2   :  { %v153_v4 = vpack.c.bf16 %v17_v1, %v16_v0  ;;  %v19_v5 = vld [vmem:[%s259_s1 + $0x18] sm:$0xff] }
   0x3   :  { %v156_v7 = vpack.c.bf16 %v19_v5, %v18_v2 }
   0x4   :  { %154 = vmatpush3.bf16.msra.mxu0 %v153_v4 }
   0x5   :  { %8 = vsyncpa [#allocation3], 0  ;;  %155 = vmatprep.subr.bf16.mxu0 %v192_v3  ;;  %v20_v8 = vld [vmem:[%s259_s1 + $0x20] sm:$0xff]  ;;  %v21_v9 = vld [vmem:[%s259_s1 + $0x28] sm:$0xff]  ;;  %vm31_vm1 = vcmask 523264   ;;  %s195_s5 = smov [#allocation2]  }
   0x6   :  { %v159_v10 = vpack.c.bf16 %v21_v9, %v20_v8  ;;  %v22_v11 = vld [vmem:[%s259_s1 + $0x30] sm:$0xff]  ;;  %v23_v12 = vld [vmem:[%s259_s1 + $0x38] sm:$0xff]  ;;  %v15_v14 = vld [vmem:[%s258_s0] sm:$0xff]  ;;  %s114_s6 = sshll.u32 %s195_s5, 4  ;;  %vm106_vm2 = vcmask 261120   ;;  %s115_s6 = int_to_ptr.vmem [resolvable:$true] %s114_s6 }
   0x7   :  { %v162_v13 = vpack.c.bf16 %v23_v12, %v22_v11  ;;  %v122_v15 = vld [vmem:[%s260_s2] ss:$0 sm:$0xff]  ;;  %s168_s1 = scalar_lea.vmem %s115_s6, 128  ;;  %p173_p1 = scmp.lt.s32.totalorder %s115_s6, %s115_s6 }
   0x8   :  { %157 = vmatpush3.bf16.msra.mxu0 %v156_v7  ;;  %p169_p0 = scmp.ne.s32.totalorder %s115_s6, %s168_s1  ;;  %p174_p2 = scmp.lt.s32.totalorder %s168_s1, %s168_s1 }
   0x9   :  { %158 = vmatprep.subr.bf16.mxu0 %v192_v3 }
   0xa   :  { %p175_p3 = por %p174_p2, %p173_p1 }
   0xc   :  { %160 = vmatpush3.bf16.msra.mxu0 %v159_v10  ;;  %p176_p4 = pnand %p175_p3, %p169_p0 }
   0xd   :  { %161 = vmatprep.subr.bf16.mxu0 %v192_v3 }
  0x10   :  { %163 = vmatpush3.bf16.msra.mxu0 %v162_v13 }
  0x13   :  { %150 = vmatmul.mubr.msk.f32.vlgmr.msra.gmra.mrb[0].mxu0 %vm31_vm1, %v15_v14 }
  0xe6   :  { %v101_v16 = vpop.f32.mrb[0].mxu0 }
  0xe7   :  { %v102_v17 = vadd.f32 %v122_v15, %v101_v16  ;;  %v151_v18 = vpop.f32.mrb[1].mxu0 }
  0xe9   :  { %v105_v19 = vmax.f32 %v102_v17, 0.0 }
  0xeb   :  { %107 = vst.msk [vmem:[#allocation2] sm:$0xff] %vm106_vm2, %v105_v19 }
  0xec   :  { %179 = shalt.err (!%p176_p4)
}
  0xed   :  { %s180_s2 = scalar_lea.hbm %s261_s3, 128 }
  0xee   :  { %p181_p5 = scmp.ne.s32.totalorder %s261_s3, %s180_s2  ;;  %p184_p6 = scmp.lt.u32.totalorder %s180_s2, %s261_s3 }
  0xf0   :  { %p186_p7 = pnand %p184_p6, %p181_p5 }
  0xf2   :  { %189 = shalt.err (!%p186_p7)
}
  0xf3   :  { %117 = dma.vmem_to_hbm [thread:$0]  %s115_s6, 128, %s261_s3, [#allocation3]  }
  0xf4   :  { %190 = dma.done.wait [#allocation3], 128  }
  0xf5   :  { %191 = vsyncadd [#allocation3], 4294967168 }
  0xf6   :  { %121 = vsyncpa [#allocation3], 1 }

// kernel: closed_call.10
= control target key start
LH: loop header
LB: loop body
LE: loop exit
PB: predicated region body
PF: predicated region fallthrough
CT: control target
= control target key end

     0   :  { %v647_v1 = vmov 0.0|0.0   ;;  %vm648_vm0 = vmmov 0   ;;  %v649_v4 = vmov 0.0   ;;  %s650_s15 = smov 96   ;;  %vm37_vm1 = vcmask 261120   ;;  %s652_s23 = smov 64   ;;  %s803_s1 = inlined_call_operand.vmem [shape: f32[8,64], index: 1, kind: input, shape index: {}]   ;;  %s804_s5 = inlined_call_operand.vmem [shape: f32[32,32], index: 5, kind: input, shape index: {}]   ;;  %s805_s2 = inlined_call_operand.vmem [shape: f32[32,96], index: 2, kind: input, shape index: {}]   ;;  %s806_s3 = inlined_call_operand.vmem [shape: f32[32,32], index: 3, kind: input, shape index: {}]   ;;  %s807_s0 = inlined_call_operand.vmem [shape: f32[8,32], index: 0, kind: input, shape index: {}]   ;;  %s808_s6 = inlined_call_operand.vmem [shape: f32[1,32], index: 6, kind: input, shape index: {}]   ;;  %s809_s7 = inlined_call_operand.vmem [shape: f32[32,32], index: 7, kind: input, shape index: {}]   ;;  %s810_s8 = inlined_call_operand.vmem [shape: f32[1,32], index: 8, kind: input, shape index: {}]   ;;  %s811_s4 = inlined_call_operand.vmem [shape: f32[1,32], index: 4, kind: input, shape index: {}]   ;;  %s812_s9 = inlined_call_operand.vmem [shape: f32[8,32], index: 9, kind: output, shape index: {}]  }
   0x1   :  { %v706_v0 = vld [vmem:[%s803_s1] sm:$0xff]  ;;  %603 = vmatprep.subr.bf16.mxu1 %v647_v1  ;;  %v113_v3 = vld [vmem:[%s804_s5 + $0x8] sm:$0xff]  ;;  %561 = vmatprep.mubr.msk.f32.mxu1 %vm648_vm0, %v649_v4  ;;  %v114_v6 = vld [vmem:[%s804_s5 + $0x10] sm:$0xff] }
   0x2   :  { %v112_v2 = vld [vmem:[%s804_s5] sm:$0xff]  ;;  %216 = vrot.lane.b32.xlu0 %v706_v0, %s650_s15  ;;  %v115_v7 = vld [vmem:[%s804_s5 + $0x18] sm:$0xff]  ;;  %597 = vmatprep.subr.bf16.mxu0 %v647_v1  ;;  %v34_v9 = vld [vmem:[%s805_s2 + $0x8] sm:$0xff] }
   0x3   :  { %v604_v5 = vpack.c.bf16 %v113_v3, %v112_v2  ;;  %v33_v8 = vld [vmem:[%s805_s2] sm:$0xff]  ;;  %v35_v10 = vld [vmem:[%s805_s2 + $0x10] sm:$0xff]  ;;  %v36_v11 = vld [vmem:[%s805_s2 + $0x18] sm:$0xff]  ;;  %550 = vmatprep.mubr.msk.f32.mxu0 %vm648_vm0, %v649_v4  ;;  %v607_v12 = vpack.c.bf16 %v115_v7, %v114_v6 }
   0x4   :  { %v598_v13 = vpack.c.bf16 %v34_v9, %v33_v8  ;;  %v306_v14 = vld [vmem:[%s806_s3] sm:$0xff]  ;;  %v307_v15 = vld [vmem:[%s806_s3 + $0x8] sm:$0xff]  ;;  %v601_v16 = vpack.c.bf16 %v36_v11, %v35_v10  ;;  %v308_v18 = vld [vmem:[%s806_s3 + $0x10] sm:$0xff] }
   0x5   :  { %605 = vmatpush3.bf16.msra.mxu1 %v604_v5  ;;  %v616_v17 = vpack.c.bf16 %v307_v15, %v306_v14  ;;  %v309_v19 = vld [vmem:[%s806_s3 + $0x18] sm:$0xff]  ;;  %v32_v20 = vld [vmem:[%s807_s0] sm:$0xff]  ;;  %s651_s0 = smov 32   ;;  %v399_v35 = vld [vmem:[%s809_s7 + $0x8] sm:$0xff] }
   0x6   :  { %606 = vmatprep.subr.bf16.mxu1 %v647_v1  ;;  %599 = vmatpush3.bf16.msra.mxu0 %v598_v13  ;;  %v619_v21 = vpack.c.bf16 %v309_v19, %v308_v18  ;;  %v508_v31 = vld [vmem:[%s808_s6] ss:$0 sm:$0xff]  ;;  %v400_v36 = vld [vmem:[%s809_s7 + $0x10] sm:$0xff]  ;;  %v401_v38 = vld [vmem:[%s809_s7 + $0x18] sm:$0xff] }
   0x7   :  { %600 = vmatprep.subr.bf16.mxu0 %v647_v1  ;;  %v398_v34 = vld [vmem:[%s809_s7] sm:$0xff]  ;;  %v625_v39 = vpack.c.bf16 %v401_v38, %v400_v36 }
   0x8   :  { %v622_v37 = vpack.c.bf16 %v399_v35, %v398_v34  ;;  %v516_v60 = vld [vmem:[%s810_s8] ss:$0 sm:$0xff] }
   0x9   :  { %608 = vmatpush3.bf16.msra.mxu1 %v607_v12 }
   0xa   :  { %615 = vmatprep.subr.bf16.mxu1 %v647_v1  ;;  %602 = vmatpush3.bf16.msra.mxu0 %v601_v16 }
   0xb   :  { %609 = vmatprep.subr.bf16.mxu0 %v647_v1 }
   0xc   :  { %562 = vmatmul.mubr.msk.f32.vlgmr.msra.gmra.mrb[0].mxu1 %vm37_vm1, %v706_v0 }
   0xd   :  { %617 = vmatpush3.bf16.msra.mxu1 %v616_v17  ;;  %583 = vmatprep.mubr.msk.f32.mxu1 %vm648_vm0, %v649_v4 }
   0xe   :  { %551 = vmatmul.mubr.msk.f32.vlgmr.msra.gmra.mrb[0].mxu0 %vm37_vm1, %v32_v20  ;;  %618 = vmatprep.subr.bf16.mxu1 %v647_v1 }
   0xf   :  { %611 = vmatpush3.bf16.msra.mxu0 %v604_v5  ;;  %572 = vmatprep.mubr.msk.f32.mxu0 %vm648_vm0, %v649_v4 }
  0x10   :  { %612 = vmatprep.subr.bf16.mxu0 %v647_v1 }
  0x11   :  { %620 = vmatpush3.bf16.msra.mxu1 %v619_v21 }
  0x13   :  { %614 = vmatpush3.bf16.msra.mxu0 %v607_v12 }
  0x14   :  { %621 = vmatprep.subr.bf16.mxu0 %v647_v1 }
  0x74   :  { %v217_v22 = vpop.permute.xlu0 %216 }
  0x75   :  { %v766_v23 = vadd.f32 %v217_v22, %v706_v0  ;;  %573 = vmatmul.mubr.msk.f32.vlgmr.msra.gmra.mrb[2].mxu0 %vm37_vm1, %v217_v22 }
  0x76   :  { %594 = vmatprep.mubr.msk.f32.mxu0 %vm648_vm0, %v649_v4  ;;  %623 = vmatpush3.bf16.msra.mxu0 %v622_v37  ;;  %v513_v4 = vld [vmem:[%s811_s4] ss:$0 sm:$0xff] }
  0x77   :  { %584 = vmatmul.mubr.msk.f32.vlgmr.msra.gmra.mrb[2].mxu1 %vm37_vm1, %v766_v23  ;;  %624 = vmatprep.subr.bf16.mxu0 %v647_v1 }
  0x7a   :  { %626 = vmatpush3.bf16.msra.mxu0 %v625_v39 }
  0xdf   :  { %v187_v24 = vpop.f32.mrb[0].mxu1 }
  0xe0   :  { %192 = vrot.lane.b32.xlu0 %v187_v24, %s651_s0  ;;  %v563_v25 = vpop.f32.mrb[1].mxu1 }
  0xe1   :  { %v107_v26 = vpop.f32.mrb[0].mxu0 }
  0xe2   :  { %v552_v27 = vpop.f32.mrb[1].mxu0 }
  0xe4   :  { %211 = vrot.lane.b32.xlu0 %v706_v0, %s651_s0 }
 0x148   :  { %v288_v28 = vpop.f32.mrb[2].mxu0 }
 0x149   :  { %293 = vrot.lane.b32.xlu1 %v288_v28, %s651_s0  ;;  %v574_v29 = vpop.f32.mrb[3].mxu0 }
 0x14a   :  { %v379_v30 = vpop.f32.mrb[2].mxu1 }
 0x14b   :  { %v383_v32 = vadd.f32 %v379_v30, %v107_v26  ;;  %v585_v33 = vpop.f32.mrb[3].mxu1 }
 0x14d   :  { %201 = vrot.lane.b32.xlu1 %v508_v31, %s651_s0  ;;  %v391_v5 = vadd.f32 %v513_v4, %v383_v32 }
 0x14f   :  { %v514_v6 = vmul.f32 -1.442695, %v391_v5 }
 0x152   :  { %v193_v40 = vpop.permute.xlu0 %192 }
 0x153   :  { %v195_v42 = vadd.f32 %v193_v40, %v107_v26 }
 0x156   :  { %v212_v53 = vpop.permute.xlu0 %211 }
 0x1bb   :  { %v294_v41 = vpop.permute.xlu1 %293 }
 0x1bc   :  { %v296_v43 = vadd.f32 %v294_v41, %v107_v26 }
 0x1bf   :  { %v202_v44 = vpop.permute.xlu1 %201 }
 0x1c0   :  { %v204_v45 = vadd.f32 %v202_v44, %v195_v42  ;;  %v297_v46 = vadd.f32 %v296_v43, %v202_v44 }
 0x1c2   :  { %v509_v47 = vmul.f32 -1.442695, %v204_v45  ;;  %v511_v48 = vmul.f32 -1.442695, %v297_v46 }
 0x1c4   :  { %633 = vpow2.f32 %v509_v47 }
 0x1c5   :  { %635 = vpow2.f32 %v511_v48 }
 0x1ce   :  { %v634_v49 = vpop.eup %633 }
 0x1cf   :  { %v636_v50 = vpop.eup %635  ;;  %v208_v51 = vadd.f32 1.0, %v634_v49 }
 0x1d0   :  { %v301_v52 = vadd.f32 1.0, %v636_v50 }
 0x1d1   :  { %637 = vrcp.f32 %v208_v51 }
 0x1d2   :  { %639 = vrcp.f32 %v301_v52 }
 0x1db   :  { %v638_v54 = vpop.eup %637 }
 0x1dc   :  { %v640_v55 = vpop.eup %639  ;;  %v214_v56 = vmul.f32 %v638_v54, %v212_v53 }
 0x1dd   :  { %v304_v57 = vmul.f32 %v640_v55, %v706_v0 }
 0x1df   :  { %v305_v58 = vadd.f32 %v304_v57, %v214_v56 }
 0x1e1   :  { %403 = vrot.lane.b32.xlu1 %v305_v58, %s650_s15 }
 0x1e5   :  { %488 = vrot.lane.b32.xlu1 %v516_v60, %s652_s23 }
 0x253   :  { %v404_v59 = vpop.permute.xlu1 %403 }
 0x254   :  { %595 = vmatmul.mubr.msk.f32.vlgmr.msra.gmra.mrb[4].mxu0 %vm37_vm1, %v404_v59 }
 0x257   :  { %v489_v1 = vpop.permute.xlu1 %488 }
 0x327   :  { %v473_v61 = vpop.f32.mrb[4].mxu0 }
 0x328   :  { %478 = vrot.lane.b32.xlu0 %v473_v61, %s652_s23  ;;  %v596_v62 = vpop.f32.mrb[5].mxu0 }
 0x39a   :  { %v479_v63 = vpop.permute.xlu0 %478 }
 0x39b   :  { %v481_v2 = vadd.f32 %v479_v63, %v107_v26 }
 0x39d   :  { %v491_v3 = vadd.f32 %v489_v1, %v481_v2 }
 0x39f   :  { %641 = vtanh.f32 %v491_v3 }
 0x3a0   :  { %643 = vpow2.f32 %v514_v6 }
 0x3a9   :  { %v642_v0 = vpop.eup %641 }
 0x3aa   :  { %496 = vrot.lane.b32.xlu0 %v642_v0, %s652_s23  ;;  %v644_v7 = vpop.eup %643 }
 0x3ab   :  { %v395_v8 = vadd.f32 1.0, %v644_v7 }
 0x3ad   :  { %645 = vrcp.f32 %v395_v8 }
 0x3b7   :  { %v646_v9 = vpop.eup %645 }
 0x3b8   :  { %v493_v10 = vsub.f32 1.0, %v646_v9 }
 0x3ba   :  { %v494_v12 = vmul.f32 %v493_v10, %v766_v23 }
 0x41c   :  { %v497_v11 = vpop.permute.xlu0 %496 }
 0x41d   :  { %v499_v13 = vmul.f32 %v646_v9, %v497_v11 }
 0x41f   :  { %v500_v14 = vadd.f32 %v499_v13, %v494_v12 }
 0x421   :  { %501 = vst.msk [vmem:[%s812_s9] sm:$0xff] %vm37_vm1, %v500_v14 }

</bundles_post_ra>
